<compile_context>
chip_gen: v6e
topology: v6e:2x2x1
jax: 0.10.0
libtpu: 0.0.40
codegen_flags: <defaults>
</compile_context>

<pallas_src>
import math
import numpy as np
import jax
import jax.numpy as jnp
from jax.experimental import pallas as pl
from jax.experimental.pallas import tpu as pltpu

# ----------------------------------------------------------------------------
# Config (module-level constants, consistent with the synthetic test shapes).
# ----------------------------------------------------------------------------
N_FFT = 16
HOP = 4
F = N_FFT // 2 + 1                 # one-sided rFFT bins (9)
B = 2                              # batch
T = 8                              # STFT frames
TF = T * F                         # flattened spectrum length (72)
L = HOP * (T - 1)                  # istft(center=True) output signal length (28)
LF = N_FFT + HOP * (T - 1)         # full OLA length == reflect-padded length (44)
HALF = N_FFT // 2

INIT_ALPHA, INIT_BETA, INIT_GAMMA = 0.1, 1.1, 0.2


# ----------------------------------------------------------------------------
# Composite proj_C1 matrices (built once, in numpy, at module import).
#   yr_flat = zr_flat @ Arr + zi_flat @ Air
#   yi_flat = zr_flat @ Ari + zi_flat @ Aii
# with (t, f) row-major flattening of the (T, F) spectrum.
# ----------------------------------------------------------------------------
def _build_composite():
    n = np.arange(N_FFT)
    k = np.arange(F)
    ang = 2.0 * np.pi * np.outer(k, n) / N_FFT            # (F, N)

    # inverse rDFT (torch.fft.irfft, norm='backward'); weights 1,2,...,2,1
    w = np.full((F, 1), 2.0)
    w[0, 0] = 1.0
    w[-1, 0] = 1.0
    irC = w * np.cos(ang) / N_FFT                          # (F, N)
    irS = -w * np.sin(ang) / N_FFT                         # (F, N)

    # forward rDFT (torch.stft, normalized=False)
    fC = np.cos(ang).T                                     # (N, F)
    fS = (-np.sin(ang)).T                                  # (N, F)

    # periodic hann window (torch.hann_window default)
    window = 0.5 - 0.5 * np.cos(2.0 * np.pi * n / N_FFT)   # (N,)

    # fold the synthesis window into the inverse-DFT matrices
    irC_w = irC * window[None, :]
    irS_w = irS * window[None, :]

    # overlap-add placement: (T*N, LF)
    OLA = np.zeros((T * N_FFT, LF))
    for t in range(T):
        for j in range(N_FFT):
            OLA[t * N_FFT + j, t * HOP + j] = 1.0

    # hann^2 OLA envelope, trimmed to the center region (torch.istft)
    full_env = np.zeros(LF)
    for t in range(T):
        full_env[t * HOP:t * HOP + N_FFT] += window ** 2
    env = full_env[HALF:HALF + L]
    # NOLA guard: this N_FFT/HOP pair satisfies COLA; fail loudly otherwise.
    assert env.min() > 1e-6, "window/hop pair violates NOLA; envelope ~0"

    # trim + envelope division: (LF, L)
    TRIM = np.zeros((LF, L))
    for i in range(L):
        TRIM[HALF + i, i] = 1.0 / env[i]

    # reflect padding (torch.stft center=True, pad_mode='reflect'): (L, LF)
    R = np.zeros((L, LF))
    for m in range(LF):
        i = m - HALF
        if i < 0:
            j = -i
        elif i >= L:
            j = 2 * L - 2 - i
        else:
            j = i
        R[j, m] = 1.0

    # framing + analysis window: (LF, T*N)
    FRW = np.zeros((LF, T * N_FFT))
    for t in range(T):
        for j in range(N_FFT):
            FRW[t * HOP + j, t * N_FFT + j] = window[j]

    # signal-domain middle section of the chain: (T*N, T*N)
    Mid = OLA @ TRIM @ R @ FRW

    # per-frame DFT blocks, replicated across frames via kron(I_T, .)
    P = np.kron(np.eye(T), irC_w)                          # (T*F, T*N)
    Q = np.kron(np.eye(T), irS_w)                          # (T*F, T*N)
    GC = np.kron(np.eye(T), fC)                            # (T*N, T*F)
    GS = np.kron(np.eye(T), fS)                            # (T*N, T*F)

    Arr = P @ Mid @ GC
    Air = Q @ Mid @ GC
    Ari = P @ Mid @ GS
    Aii = Q @ Mid @ GS
    return np.stack([Arr, Air, Ari, Aii]).astype(np.float32)   # (4, TF, TF)


_COMPOSITE = jnp.asarray(_build_composite())               # built once per process


# ----------------------------------------------------------------------------
# Pallas kernel: proj_C2 + composite proj_C1 + AGLA update, whole batch at once.
# ----------------------------------------------------------------------------
def agla_kernel(params_ref,        # SMEM (3,): alpha, beta, gamma
                data_ref,          # VMEM (7, B, TF): cr, ci, tpr, tpi, dpr, dpi, mag
                m_ref,             # VMEM (4, TF, TF): Arr, Air, Ari, Aii
                out_ref):          # VMEM (6, B, TF): cr, ci, tr, ti, dr, di
    alpha = params_ref[0]
    beta = params_ref[1]
    gamma = params_ref[2]

    cr = data_ref[0]               # (B, TF)
    ci = data_ref[1]
    tpr = data_ref[2]
    tpi = data_ref[3]
    dpr = data_ref[4]
    dpi = data_ref[5]
    mag = data_ref[6]

    # ---- proj_C2: keep phase, impose target magnitude ----------------------
    scale = mag / (jnp.sqrt(cr * cr + ci * ci) + 1e-8)
    zr = cr * scale
    zi = ci * scale

    # ---- proj_C1: ISTFT -> STFT collapsed into precomputed matrices --------
    yr = (jnp.dot(zr, m_ref[0], preferred_element_type=jnp.float32) +
          jnp.dot(zi, m_ref[1], preferred_element_type=jnp.float32))   # (B, TF)
    yi = (jnp.dot(zr, m_ref[2], preferred_element_type=jnp.float32) +
          jnp.dot(zi, m_ref[3], preferred_element_type=jnp.float32))   # (B, TF)

    # ---- accelerated Griffin-Lim update -------------------------------------
    tr = (1.0 - gamma) * dpr + gamma * yr
    ti = (1.0 - gamma) * dpi + gamma * yi

    out_ref[0] = tr + alpha * (tr - tpr)    # c real
    out_ref[1] = ti + alpha * (ti - tpi)    # c imag
    out_ref[2] = tr                         # t real
    out_ref[3] = ti                         # t imag
    out_ref[4] = tr + beta * (tr - tpr)     # d real
    out_ref[5] = ti + beta * (ti - tpi)     # d imag


# ----------------------------------------------------------------------------
# Learnable-parameter constraint math (scalar glue, matches the PyTorch module)
# ----------------------------------------------------------------------------
def _max_beta(gamma):
    mask = gamma <= 1.0
    out = jnp.where(mask,
                    (2.0 - gamma) / (2.0 * (1.0 - gamma + 1e-6)),
                    (2.0 - gamma) / (2.0 * (gamma - 1.0 + 1e-6)))
    return jnp.maximum(out, 1e-4)


def _max_alpha(beta, gamma):
    mask = gamma <= 1.0
    out = jnp.where(mask,
                    (1.0 - 1.0 / gamma) * beta + 1.0 / gamma - 0.5,
                    1.0 / (2.0 * beta * (gamma - 1.0) + gamma) - 0.5)
    return jnp.maximum(out, 1e-4)


def _constrained_params():
    # deterministic init, same as nn.Parameter init in __init__
    u_alpha = jnp.float32(math.atanh(2.0 * INIT_ALPHA - 1.0))
    u_beta = jnp.float32(math.log(INIT_BETA))
    u_gamma = jnp.float32(math.atanh(INIT_GAMMA - 1.0))

    gamma = 1.0 + 0.5 * (1.0 + jnp.tanh(u_gamma))
    beta = _max_beta(gamma) * jax.nn.sigmoid(u_beta)
    alpha = _max_alpha(beta, gamma) * jax.nn.sigmoid(u_alpha)
    return alpha, beta, gamma


# ----------------------------------------------------------------------------
# Wrapper: AGLALayer.forward (jit'd so constants are uploaded once)
# ----------------------------------------------------------------------------
@jax.jit
def agla_forward(c_prev, t_prev, d_prev, target_mag):
    """c_prev, t_prev, d_prev: complex64 (B, F, T); target_mag: float32 (B, F, T).
    Returns (c, t, d) complex64 (B, F, T)."""
    def flat(z):
        zt = jnp.transpose(z, (0, 2, 1)).reshape(B, TF)     # (t, f) row-major
        return (jnp.real(zt).astype(jnp.float32),
                jnp.imag(zt).astype(jnp.float32))

    cr, ci = flat(c_prev)
    tpr, tpi = flat(t_prev)
    dpr, dpi = flat(d_prev)
    mag = jnp.transpose(target_mag, (0, 2, 1)).reshape(B, TF).astype(jnp.float32)

    data = jnp.stack([cr, ci, tpr, tpi, dpr, dpi, mag], axis=0)   # (7, B, TF)

    alpha, beta, gamma = _constrained_params()
    params = jnp.stack([alpha, beta, gamma]).astype(jnp.float32)

    # TODO(synk): if B grows beyond the toy size, add grid=(B,) with
    # dimension_semantics=("parallel",) to shard across v7x's two TensorCores.
    out = pl.pallas_call(
        agla_kernel,
        out_shape=jax.ShapeDtypeStruct((6, B, TF), jnp.float32),
        in_specs=[
            pl.BlockSpec(memory_space=pltpu.MemorySpace.SMEM),   # params
            pl.BlockSpec(memory_space=pltpu.MemorySpace.VMEM),   # fused data slab
            pl.BlockSpec(memory_space=pltpu.MemorySpace.VMEM),   # composite mats
        ],
        out_specs=pl.BlockSpec(memory_space=pltpu.MemorySpace.VMEM),
    )(params, data, _COMPOSITE)

    def unflat(r, i):
        z = jax.lax.complex(r, i).reshape(B, T, F)
        return jnp.transpose(z, (0, 2, 1)).astype(jnp.complex64)

    c = unflat(out[0], out[1])
    t = unflat(out[2], out[3])
    d = unflat(out[4], out[5])
    return c, t, d


# ----------------------------------------------------------------------------
if __name__ == "__main__":
    key = jax.random.PRNGKey(0)
    ks = jax.random.split(key, 7)
    shape = (B, F, T)

    def cplx(kr, ki):
        return (jax.random.normal(kr, shape, jnp.float32)
                + 1j * jax.random.normal(ki, shape, jnp.float32)).astype(jnp.complex64)

    c_prev = cplx(ks[0], ks[1])
    t_prev = cplx(ks[2], ks[3])
    d_prev = cplx(ks[4], ks[5])
    target_mag = jnp.abs(jax.random.normal(ks[6], shape, jnp.float32))

    c, t, d = agla_forward(c_prev, t_prev, d_prev, target_mag)
    jax.block_until_ready((c, t, d))

    assert c.shape == shape and t.shape == shape and d.shape == shape
    assert c.dtype == jnp.complex64 and t.dtype == jnp.complex64 and d.dtype == jnp.complex64
    print("KERNEL_OK")
</pallas_src>

<mosaic_0001>
module attributes {stable_mosaic.version = 11 : i64} {
  func.func @agla_kernel(%arg0: memref<3xf32, #tpu.memory_space<smem>>, %arg1: memref<7x2x72xf32, #tpu.memory_space<vmem>>, %arg2: memref<4x72x72xf32, #tpu.memory_space<vmem>>, %arg3: memref<6x2x72xf32, #tpu.memory_space<vmem>>) attributes {dimension_semantics = [], scalar_prefetch = 0 : i64, scratch_operands = 0 : i64, tpu.core_type = #tpu.core_type<tc>} {
    %c0 = arith.constant 0 : index
    %0 = memref.load %arg0[%c0] : memref<3xf32, #tpu.memory_space<smem>>
    %c1 = arith.constant 1 : index
    %1 = memref.load %arg0[%c1] : memref<3xf32, #tpu.memory_space<smem>>
    %c2 = arith.constant 2 : index
    %2 = memref.load %arg0[%c2] : memref<3xf32, #tpu.memory_space<smem>>
    %c0_0 = arith.constant 0 : index
    %c0_1 = arith.constant 0 : index
    %c0_2 = arith.constant 0 : index
    %3 = vector.load %arg1[%c0_0, %c0_1, %c0_2] : memref<7x2x72xf32, #tpu.memory_space<vmem>>, vector<1x2x72xf32>
    %4 = vector.shape_cast %3 : vector<1x2x72xf32> to vector<2x72xf32>
    %c1_3 = arith.constant 1 : index
    %c0_4 = arith.constant 0 : index
    %c0_5 = arith.constant 0 : index
    %5 = vector.load %arg1[%c1_3, %c0_4, %c0_5] : memref<7x2x72xf32, #tpu.memory_space<vmem>>, vector<1x2x72xf32>
    %6 = vector.shape_cast %5 : vector<1x2x72xf32> to vector<2x72xf32>
    %c2_6 = arith.constant 2 : index
    %c0_7 = arith.constant 0 : index
    %c0_8 = arith.constant 0 : index
    %7 = vector.load %arg1[%c2_6, %c0_7, %c0_8] : memref<7x2x72xf32, #tpu.memory_space<vmem>>, vector<1x2x72xf32>
    %8 = vector.shape_cast %7 : vector<1x2x72xf32> to vector<2x72xf32>
    %c3 = arith.constant 3 : index
    %c0_9 = arith.constant 0 : index
    %c0_10 = arith.constant 0 : index
    %9 = vector.load %arg1[%c3, %c0_9, %c0_10] : memref<7x2x72xf32, #tpu.memory_space<vmem>>, vector<1x2x72xf32>
    %10 = vector.shape_cast %9 : vector<1x2x72xf32> to vector<2x72xf32>
    %c4 = arith.constant 4 : index
    %c0_11 = arith.constant 0 : index
    %c0_12 = arith.constant 0 : index
    %11 = vector.load %arg1[%c4, %c0_11, %c0_12] : memref<7x2x72xf32, #tpu.memory_space<vmem>>, vector<1x2x72xf32>
    %12 = vector.shape_cast %11 : vector<1x2x72xf32> to vector<2x72xf32>
    %c5 = arith.constant 5 : index
    %c0_13 = arith.constant 0 : index
    %c0_14 = arith.constant 0 : index
    %13 = vector.load %arg1[%c5, %c0_13, %c0_14] : memref<7x2x72xf32, #tpu.memory_space<vmem>>, vector<1x2x72xf32>
    %14 = vector.shape_cast %13 : vector<1x2x72xf32> to vector<2x72xf32>
    %c6 = arith.constant 6 : index
    %c0_15 = arith.constant 0 : index
    %c0_16 = arith.constant 0 : index
    %15 = vector.load %arg1[%c6, %c0_15, %c0_16] : memref<7x2x72xf32, #tpu.memory_space<vmem>>, vector<1x2x72xf32>
    %16 = vector.shape_cast %15 : vector<1x2x72xf32> to vector<2x72xf32>
    %17 = arith.mulf %4, %4 : vector<2x72xf32>
    %18 = arith.mulf %6, %6 : vector<2x72xf32>
    %19 = arith.addf %17, %18 : vector<2x72xf32>
    %20 = math.sqrt %19 : vector<2x72xf32>
    %cst = arith.constant 9.99999993E-9 : f32
    %21 = vector.broadcast %cst : f32 to vector<2x72xf32>
    %22 = arith.addf %20, %21 : vector<2x72xf32>
    %23 = arith.divf %16, %22 : vector<2x72xf32>
    %24 = arith.mulf %4, %23 : vector<2x72xf32>
    %25 = arith.mulf %6, %23 : vector<2x72xf32>
    %c0_17 = arith.constant 0 : index
    %c0_18 = arith.constant 0 : index
    %c0_19 = arith.constant 0 : index
    %26 = vector.load %arg2[%c0_17, %c0_18, %c0_19] : memref<4x72x72xf32, #tpu.memory_space<vmem>>, vector<1x72x72xf32>
    %27 = vector.shape_cast %26 : vector<1x72x72xf32> to vector<72x72xf32>
    %cst_20 = arith.constant dense<0.000000e+00> : vector<2x72xf32>
    %28 = tpu.matmul %24, %27, %cst_20 {dimension_numbers = #tpu.dot_dimension_numbers<[1], [0], [0], [1], [0, 0, 1, 1], [], []>} : vector<2x72xf32>, vector<72x72xf32>, vector<2x72xf32> -> vector<2x72xf32>
    %c1_21 = arith.constant 1 : index
    %c0_22 = arith.constant 0 : index
    %c0_23 = arith.constant 0 : index
    %29 = vector.load %arg2[%c1_21, %c0_22, %c0_23] : memref<4x72x72xf32, #tpu.memory_space<vmem>>, vector<1x72x72xf32>
    %30 = vector.shape_cast %29 : vector<1x72x72xf32> to vector<72x72xf32>
    %cst_24 = arith.constant dense<0.000000e+00> : vector<2x72xf32>
    %31 = tpu.matmul %25, %30, %cst_24 {dimension_numbers = #tpu.dot_dimension_numbers<[1], [0], [0], [1], [0, 0, 1, 1], [], []>} : vector<2x72xf32>, vector<72x72xf32>, vector<2x72xf32> -> vector<2x72xf32>
    %32 = arith.addf %28, %31 : vector<2x72xf32>
    %c2_25 = arith.constant 2 : index
    %c0_26 = arith.constant 0 : index
    %c0_27 = arith.constant 0 : index
    %33 = vector.load %arg2[%c2_25, %c0_26, %c0_27] : memref<4x72x72xf32, #tpu.memory_space<vmem>>, vector<1x72x72xf32>
    %34 = vector.shape_cast %33 : vector<1x72x72xf32> to vector<72x72xf32>
    %cst_28 = arith.constant dense<0.000000e+00> : vector<2x72xf32>
    %35 = tpu.matmul %24, %34, %cst_28 {dimension_numbers = #tpu.dot_dimension_numbers<[1], [0], [0], [1], [0, 0, 1, 1], [], []>} : vector<2x72xf32>, vector<72x72xf32>, vector<2x72xf32> -> vector<2x72xf32>
    %c3_29 = arith.constant 3 : index
    %c0_30 = arith.constant 0 : index
    %c0_31 = arith.constant 0 : index
    %36 = vector.load %arg2[%c3_29, %c0_30, %c0_31] : memref<4x72x72xf32, #tpu.memory_space<vmem>>, vector<1x72x72xf32>
    %37 = vector.shape_cast %36 : vector<1x72x72xf32> to vector<72x72xf32>
    %cst_32 = arith.constant dense<0.000000e+00> : vector<2x72xf32>
    %38 = tpu.matmul %25, %37, %cst_32 {dimension_numbers = #tpu.dot_dimension_numbers<[1], [0], [0], [1], [0, 0, 1, 1], [], []>} : vector<2x72xf32>, vector<72x72xf32>, vector<2x72xf32> -> vector<2x72xf32>
    %39 = arith.addf %35, %38 : vector<2x72xf32>
    %cst_33 = arith.constant 1.000000e+00 : f32
    %40 = arith.subf %cst_33, %2 : f32
    %41 = vector.broadcast %40 : f32 to vector<2x72xf32>
    %42 = arith.mulf %41, %12 : vector<2x72xf32>
    %43 = vector.broadcast %2 : f32 to vector<2x72xf32>
    %44 = arith.mulf %43, %32 : vector<2x72xf32>
    %45 = arith.addf %42, %44 : vector<2x72xf32>
    %cst_34 = arith.constant 1.000000e+00 : f32
    %46 = arith.subf %cst_34, %2 : f32
    %47 = vector.broadcast %46 : f32 to vector<2x72xf32>
    %48 = arith.mulf %47, %14 : vector<2x72xf32>
    %49 = vector.broadcast %2 : f32 to vector<2x72xf32>
    %50 = arith.mulf %49, %39 : vector<2x72xf32>
    %51 = arith.addf %48, %50 : vector<2x72xf32>
    %52 = arith.subf %45, %8 : vector<2x72xf32>
    %53 = vector.broadcast %0 : f32 to vector<2x72xf32>
    %54 = arith.mulf %53, %52 : vector<2x72xf32>
    %55 = arith.addf %45, %54 : vector<2x72xf32>
    %c0_35 = arith.constant 0 : index
    %c0_36 = arith.constant 0 : index
    %c0_37 = arith.constant 0 : index
    %56 = vector.load %arg3[%c0_35, %c0_36, %c0_37] : memref<6x2x72xf32, #tpu.memory_space<vmem>>, vector<1x2x72xf32>
    %57 = vector.shape_cast %56 : vector<1x2x72xf32> to vector<2x72xf32>
    %58 = vector.shape_cast %55 : vector<2x72xf32> to vector<1x2x72xf32>
    tpu.vector_store %arg3[%c0_35, %c0_36, %c0_37], %58 {strides = array<i32>} : memref<6x2x72xf32, #tpu.memory_space<vmem>>, vector<1x2x72xf32>,
    %59 = arith.subf %51, %10 : vector<2x72xf32>
    %60 = vector.broadcast %0 : f32 to vector<2x72xf32>
    %61 = arith.mulf %60, %59 : vector<2x72xf32>
    %62 = arith.addf %51, %61 : vector<2x72xf32>
    %c1_38 = arith.constant 1 : index
    %c0_39 = arith.constant 0 : index
    %c0_40 = arith.constant 0 : index
    %63 = vector.load %arg3[%c1_38, %c0_39, %c0_40] : memref<6x2x72xf32, #tpu.memory_space<vmem>>, vector<1x2x72xf32>
    %64 = vector.shape_cast %63 : vector<1x2x72xf32> to vector<2x72xf32>
    %65 = vector.shape_cast %62 : vector<2x72xf32> to vector<1x2x72xf32>
    tpu.vector_store %arg3[%c1_38, %c0_39, %c0_40], %65 {strides = array<i32>} : memref<6x2x72xf32, #tpu.memory_space<vmem>>, vector<1x2x72xf32>,
    %c2_41 = arith.constant 2 : index
    %c0_42 = arith.constant 0 : index
    %c0_43 = arith.constant 0 : index
    %66 = vector.load %arg3[%c2_41, %c0_42, %c0_43] : memref<6x2x72xf32, #tpu.memory_space<vmem>>, vector<1x2x72xf32>
    %67 = vector.shape_cast %66 : vector<1x2x72xf32> to vector<2x72xf32>
    %68 = vector.shape_cast %45 : vector<2x72xf32> to vector<1x2x72xf32>
    tpu.vector_store %arg3[%c2_41, %c0_42, %c0_43], %68 {strides = array<i32>} : memref<6x2x72xf32, #tpu.memory_space<vmem>>, vector<1x2x72xf32>,
    %c3_44 = arith.constant 3 : index
    %c0_45 = arith.constant 0 : index
    %c0_46 = arith.constant 0 : index
    %69 = vector.load %arg3[%c3_44, %c0_45, %c0_46] : memref<6x2x72xf32, #tpu.memory_space<vmem>>, vector<1x2x72xf32>
    %70 = vector.shape_cast %69 : vector<1x2x72xf32> to vector<2x72xf32>
    %71 = vector.shape_cast %51 : vector<2x72xf32> to vector<1x2x72xf32>
    tpu.vector_store %arg3[%c3_44, %c0_45, %c0_46], %71 {strides = array<i32>} : memref<6x2x72xf32, #tpu.memory_space<vmem>>, vector<1x2x72xf32>,
    %72 = arith.subf %45, %8 : vector<2x72xf32>
    %73 = vector.broadcast %1 : f32 to vector<2x72xf32>
    %74 = arith.mulf %73, %72 : vector<2x72xf32>
    %75 = arith.addf %45, %74 : vector<2x72xf32>
    %c4_47 = arith.constant 4 : index
    %c0_48 = arith.constant 0 : index
    %c0_49 = arith.constant 0 : index
    %76 = vector.load %arg3[%c4_47, %c0_48, %c0_49] : memref<6x2x72xf32, #tpu.memory_space<vmem>>, vector<1x2x72xf32>
    %77 = vector.shape_cast %76 : vector<1x2x72xf32> to vector<2x72xf32>
    %78 = vector.shape_cast %75 : vector<2x72xf32> to vector<1x2x72xf32>
    tpu.vector_store %arg3[%c4_47, %c0_48, %c0_49], %78 {strides = array<i32>} : memref<6x2x72xf32, #tpu.memory_space<vmem>>, vector<1x2x72xf32>,
    %79 = arith.subf %51, %10 : vector<2x72xf32>
    %80 = vector.broadcast %1 : f32 to vector<2x72xf32>
    %81 = arith.mulf %80, %79 : vector<2x72xf32>
    %82 = arith.addf %51, %81 : vector<2x72xf32>
    %c5_50 = arith.constant 5 : index
    %c0_51 = arith.constant 0 : index
    %c0_52 = arith.constant 0 : index
    %83 = vector.load %arg3[%c5_50, %c0_51, %c0_52] : memref<6x2x72xf32, #tpu.memory_space<vmem>>, vector<1x2x72xf32>
    %84 = vector.shape_cast %83 : vector<1x2x72xf32> to vector<2x72xf32>
    %85 = vector.shape_cast %82 : vector<2x72xf32> to vector<1x2x72xf32>
    tpu.vector_store %arg3[%c5_50, %c0_51, %c0_52], %85 {strides = array<i32>} : memref<6x2x72xf32, #tpu.memory_space<vmem>>, vector<1x2x72xf32>,
    return
  }
}

</mosaic_0001>

<bundles_post_ra>
// kernel: custom-call
= control target key start
LH: loop header
LB: loop body
LE: loop exit
PB: predicated region body
PF: predicated region fallthrough
CT: control target
= control target key end

     0   :  { %2 = vsyncpa [#allocation0], 0  ;;  %s47_s0 = inlined_call_operand.hbm [shape: c64[2,9,8], index: 0, kind: input, shape index: {}]   ;;  %s48_s1 = inlined_call_operand.vmem [shape: f32[2,9,8], index: 1, kind: output, shape index: {}]  }
   0x1   :  { %s3_s8 = sshll.u32 %s48_s1, 4  ;;  %s4_s8 = int_to_ptr.vmem [resolvable:$true] %s3_s8 }
   0x2   :  { %s17_s9 = scalar_lea.vmem %s4_s8, 256  ;;  %p22_p1 = scmp.lt.s32.totalorder %s4_s8, %s4_s8 }
   0x3   :  { %p18_p0 = scmp.ne.s32.totalorder %s4_s8, %s17_s9  ;;  %p23_p2 = scmp.lt.s32.totalorder %s17_s9, %s17_s9 }
   0x5   :  { %p24_p3 = por %p23_p2, %p22_p1 }
   0x7   :  { %p25_p4 = pnand %p24_p3, %p18_p0 }
   0x9   :  { %28 = shalt.err (!%p25_p4)  }
   0xa   :  { %6 = dma.hbm_to_vmem [thread:$0]  %s47_s0, 256, %s4_s8, [#allocation0] }
   0xb   :  { %29 = dma.done.wait [#allocation0], 256  }
   0xc   :  { %30 = vsyncadd [#allocation0], 4294967040 }
   0xd   :  { %8 = vsyncpa [#allocation0], 1 }

// kernel: custom-call.1
= control target key start
LH: loop header
LB: loop body
LE: loop exit
PB: predicated region body
PF: predicated region fallthrough
CT: control target
= control target key end

     0   :  { %s51_s0 = inlined_call_operand.hbm [shape: c64[2,9,8], index: 0, kind: input, shape index: {}]   ;;  %s52_s1 = inlined_call_operand.vmem [shape: f32[2,9,8], index: 1, kind: output, shape index: {}]  }
   0x1   :  { %s2_s8 = scalar_lea.hbm %s51_s0, 256 }
   0x2   :  { %3 = vsyncpa [#allocation0], 0  ;;  %s4_s11 = sshll.u32 %s52_s1, 4  ;;  %s5_s11 = int_to_ptr.vmem [resolvable:$true] %s4_s11 }
   0x3   :  { %s20_s12 = scalar_lea.vmem %s5_s11, 256  ;;  %p25_p1 = scmp.lt.s32.totalorder %s5_s11, %s5_s11 }
   0x4   :  { %p21_p0 = scmp.ne.s32.totalorder %s5_s11, %s20_s12  ;;  %p26_p2 = scmp.lt.s32.totalorder %s20_s12, %s20_s12 }
   0x6   :  { %p27_p3 = por %p26_p2, %p25_p1 }
   0x8   :  { %p28_p4 = pnand %p27_p3, %p21_p0 }
   0xa   :  { %31 = shalt.err (!%p28_p4)  }
   0xb   :  { %7 = dma.hbm_to_vmem [thread:$0]  %s2_s8, 256, %s5_s11, [#allocation0] }
   0xc   :  { %33 = dma.done.wait [#allocation0], 256  }
   0xd   :  { %34 = vsyncadd [#allocation0], 4294967040 }
   0xe   :  { %9 = vsyncpa [#allocation0], 1 }

// kernel: custom-call.8
= control target key start
LH: loop header
LB: loop body
LE: loop exit
PB: predicated region body
PF: predicated region fallthrough
CT: control target
= control target key end

     0   :  { %s92_s0 = inlined_call_operand.vmem [shape: f32[2,9,8], index: 0, kind: input, shape index: {}]   ;;  %s93_s1 = inlined_call_operand.vmem [shape: f32[2,9,8], index: 1, kind: input, shape index: {}]   ;;  %s94_s2 = inlined_call_operand.hbm [shape: c64[2,9,8], index: 2, kind: output, shape index: {}]  }
   0x1   :  { %s3_s11 = scalar_lea.hbm %s94_s2, 256 }
   0x2   :  { %4 = vsyncpa [#allocation0], 0  ;;  %s5_s14 = sshll.u32 %s92_s0, 4  ;;  %s6_s14 = int_to_ptr.vmem [resolvable:$true] %s5_s14 }
   0x3   :  { %s18_s15 = scalar_lea.vmem %s6_s14, 256  ;;  %p23_p1 = scmp.lt.s32.totalorder %s6_s14, %s6_s14 }
   0x4   :  { %p19_p0 = scmp.ne.s32.totalorder %s6_s14, %s18_s15  ;;  %p24_p2 = scmp.lt.s32.totalorder %s18_s15, %s18_s15 }
   0x6   :  { %p25_p3 = por %p24_p2, %p23_p1 }
   0x8   :  { %p26_p4 = pnand %p25_p3, %p19_p0 }
   0xa   :  { %29 = shalt.err (!%p26_p4)  }
   0xb   :  { %8 = dma.vmem_to_hbm [thread:$0]  %s6_s14, 256, %s94_s2, [#allocation0] }
   0xc   :  { %61 = dma.done.wait [#allocation0], 256  }
   0xd   :  { %62 = vsyncadd [#allocation0], 4294967040 }
   0xe   :  { %10 = vsyncpa [#allocation0], 1 }
   0xf   :  { %11 = vsyncpa [#allocation1], 0  ;;  %s12_s0 = sshll.u32 %s93_s1, 4  ;;  %s13_s0 = int_to_ptr.vmem [resolvable:$true] %s12_s0 }
  0x10   :  { %s38_s20 = scalar_lea.vmem %s13_s0, 256  ;;  %p43_p6 = scmp.lt.s32.totalorder %s13_s0, %s13_s0 }
  0x11   :  { %p39_p5 = scmp.ne.s32.totalorder %s13_s0, %s38_s20  ;;  %p44_p7 = scmp.lt.s32.totalorder %s38_s20, %s38_s20 }
  0x13   :  { %p45_p8 = por %p44_p7, %p43_p6 }
  0x15   :  { %p46_p9 = pnand %p45_p8, %p39_p5 }
  0x17   :  { %49 = shalt.err (!%p46_p9)  }
  0x18   :  { %15 = dma.vmem_to_hbm [thread:$0]  %s13_s0, 256, %s3_s11, [#allocation1] }
  0x19   :  { %63 = dma.done.wait [#allocation1], 256  }
  0x1a   :  { %64 = vsyncadd [#allocation1], 4294967040 }
  0x1b   :  { %17 = vsyncpa [#allocation1], 1 }

// kernel: agla_forward.1
= control target key start
LH: loop header
LB: loop body
LE: loop exit
PB: predicated region body
PF: predicated region fallthrough
CT: control target
= control target key end

     0   :  { %8 = vsyncpa [#allocation4], 0  ;;  %s759_s0 = inlined_call_operand.vmem [shape: f32[3], index: 0, kind: input, shape index: {}]   ;;  %s760_s1 = inlined_call_operand.vmem [shape: f32[7,2,72], index: 1, kind: input, shape index: {}]   ;;  %s761_s2 = inlined_call_operand.hbm [shape: f32[4,72,72], index: 2, kind: input, shape index: {}]   ;;  %s762_s3 = inlined_call_operand.vmem [shape: f32[6,2,72], index: 3, kind: output, shape index: {}]  }
   0x1   :  { %s16_s14 = sshll.u32 %s759_s0, 4  ;;  %s17_s14 = int_to_ptr.vmem [resolvable:$true] %s16_s14 }
   0x2   :  { %9 = vsyncpa [#allocation3], 0  ;;  %s588_s15 = scalar_lea.vmem %s17_s14, 16  ;;  %p593_p1 = scmp.lt.s32.totalorder %s17_s14, %s17_s14 }
   0x3   :  { %p589_p0 = scmp.ne.s32.totalorder %s17_s14, %s588_s15  ;;  %p594_p2 = scmp.lt.s32.totalorder %s588_s15, %s588_s15 }
   0x5   :  { %p595_p3 = por %p594_p2, %p593_p1 }
   0x7   :  { %p596_p4 = pnand %p595_p3, %p589_p0 }
   0x9   :  { %599 = shalt.err (!%p596_p4)
}
   0xa   :  { %s624_s16 = smov [#allocation2]   ;;  %s625_s17 = smov [#allocation5]  }
   0xb   :  { %19 = dma.vmem_to_smem %s17_s14, 16, %s624_s16, [#allocation4]  }
   0xc   :  { %s27_s18 = sshll.u32 %s625_s17, 4  ;;  %s28_s18 = int_to_ptr.vmem [resolvable:$true] %s27_s18 }
   0xd   :  { %s608_s19 = scalar_lea.vmem %s28_s18, 4608  ;;  %p613_p6 = scmp.lt.s32.totalorder %s28_s18, %s28_s18 }
   0xe   :  { %p609_p5 = scmp.ne.s32.totalorder %s28_s18, %s608_s19  ;;  %p614_p7 = scmp.lt.s32.totalorder %s608_s19, %s608_s19 }
  0x10   :  { %p615_p8 = por %p614_p7, %p613_p6 }
  0x12   :  { %p616_p9 = pnand %p615_p8, %p609_p5 }
  0x14   :  { %619 = shalt.err (!%p616_p9)
}
  0x15   :  { %s626_s0 = smov 128   ;;  %s627_s20 = smov 8  }
  0x16   :  { %33 = dma.hbm_to_vmem [thread:$0]  %s761_s2, 4608, %s28_s18, [#allocation3], %s626_s0, %s626_s0, %s627_s20  }
  0x17   :  { %620 = dma.done.wait [#allocation4], 16  }
  0x18   :  { %621 = vsyncadd [#allocation4], 4294967280 }
  0x19   :  { %622 = dma.done.wait [#allocation3], 4608  }
  0x1a   :  { %623 = vsyncadd [#allocation3], 4294962688 }
  0x1b   :  { %40 = sfence }
  0x1c   :  { %v90_v0 = vld [vmem:[#allocation5 + $0x88] sm:$0xff]  ;;  %v80_v1 = vld [vmem:[#allocation5 + $0x40] sm:$0xff]  ;;  %v628_v2 = vmov 0.0   ;;  %v79_v4 = vld [vmem:[#allocation5 + $0x38] sm:$0xff]  ;;  %vm629_vm0 = vmmov 0   ;;  %vm91_vm3 = vcmask 588800  }
  0x1d   :  { %494 = vmatprep.subr.mxu0 %v628_v2  ;;  %515 = vmatprep.subr.mxu1 %v628_v2  ;;  %v89_v3 = vld [vmem:[#allocation5 + $0x80] sm:$0xff]  ;;  %v88_v5 = vld [vmem:[#allocation5 + $0x78] sm:$0xff]  ;;  %v78_v6 = vld [vmem:[#allocation5 + $0x30] sm:$0xff]  ;;  %s713_s28 = sld [smem:[#allocation2 + $0x2]]  ;;  %vm411_vm4 = vcmask 582656  }
  0x1e   :  { %495 = vmatpush3.msra.mxu0 %v90_v0  ;;  %516 = vmatpush3.msra.mxu1 %v80_v1  ;;  %v87_v7 = vld [vmem:[#allocation5 + $0x70] sm:$0xff]  ;;  %v77_v8 = vld [vmem:[#allocation5 + $0x28] sm:$0xff]  ;;  %v44_v9 = vld [vmem:[%s760_s1] sm:$0x3]  ;;  %s716_s30 = sld [smem:[#allocation2]] }
  0x1f   :  { %496 = vmatprep.subr.mxu0 %v628_v2  ;;  %517 = vmatprep.subr.mxu1 %v628_v2  ;;  %v439_v10 = vld [vmem:[%s760_s1 + $0x2] sm:$0x3]  ;;  %v86_v11 = vld [vmem:[#allocation5 + $0x68] sm:$0xff]  ;;  %v57_v13 = vmul.f32 %v44_v9, %v44_v9  ;;  %v75_v16 = vld [vmem:[#allocation5 + $0x18] sm:$0xff]  ;;  %s718_s4 = sld [smem:[#allocation2 + $0x1]] }
  0x20   :  { %497 = vmatpush3.msra.mxu0 %v89_v3  ;;  %518 = vmatpush3.msra.mxu1 %v79_v4  ;;  %v76_v12 = vld [vmem:[#allocation5 + $0x20] sm:$0xff]  ;;  %v58_v14 = vmul.f32 %v439_v10, %v439_v10  ;;  %v84_v18 = vld [vmem:[#allocation5 + $0x58] sm:$0xff]  ;;  %v74_v19 = vld [vmem:[#allocation5 + $0x10] sm:$0xff] }
  0x21   :  { %498 = vmatprep.subr.mxu0 %v628_v2  ;;  %519 = vmatprep.subr.mxu1 %v628_v2  ;;  %v85_v15 = vld [vmem:[#allocation5 + $0x60] sm:$0xff]  ;;  %v83_v20 = vld [vmem:[#allocation5 + $0x50] sm:$0xff]  ;;  %v73_v21 = vld [vmem:[#allocation5 + $0x8] sm:$0xff] }
  0x22   :  { %499 = vmatpush3.msra.mxu0 %v88_v5  ;;  %520 = vmatpush3.msra.mxu1 %v78_v6  ;;  %v59_v17 = vadd.f32 %v58_v14, %v57_v13  ;;  %v82_v22 = vld [vmem:[#allocation5 + $0x48] sm:$0xff]  ;;  %v72_v23 = vld [vmem:[#allocation5] sm:$0xff]  ;;  %v257_v35 = vld [vmem:[#allocation5 + $0x118] sm:$0xff] }
  0x23   :  { %500 = vmatprep.subr.mxu0 %v628_v2  ;;  %521 = vmatprep.subr.mxu1 %v628_v2  ;;  %v444_v30 = vld [vmem:[%s760_s1 + $0xc] sm:$0x3]  ;;  %v247_v36 = vld [vmem:[#allocation5 + $0xd0] sm:$0xff]  ;;  %v245_v40 = vld [vmem:[#allocation5 + $0xc0] sm:$0xff]  ;;  %s398_s29 = ssub.f32 1.0, %s713_s28  ;;  %v401_v57 = vstv %s713_s28 }
  0x24   :  { %501 = vmatpush3.msra.mxu0 %v87_v7  ;;  %522 = vmatpush3.msra.mxu1 %v77_v8  ;;  %584 = vrsqrt.f32 %v59_v17  ;;  %vm62_vm1 = vcmp.eq.f32.partialorder %v59_v17, inf  ;;  %v65_v25 = vand.u32 2147483648, %v59_v17  ;;  %vm64_vm2 = vcmp.eq.f32.partialorder %v59_v17, 0.0  ;;  %v256_v37 = vld [vmem:[#allocation5 + $0x110] sm:$0xff]  ;;  %v246_v38 = vld [vmem:[#allocation5 + $0xc8] sm:$0xff]  ;;  %v254_v41 = vld [vmem:[#allocation5 + $0x100] sm:$0xff] }
  0x25   :  { %502 = vmatprep.subr.mxu0 %v628_v2  ;;  %523 = vmatprep.subr.mxu1 %v628_v2  ;;  %v255_v39 = vld [vmem:[#allocation5 + $0x108] sm:$0xff]  ;;  %v244_v42 = vld [vmem:[#allocation5 + $0xb8] sm:$0xff]  ;;  %v243_v44 = vld [vmem:[#allocation5 + $0xb0] sm:$0xff]  ;;  %v399_v54 = vstv %s398_s29  ;;  %v408_v1 = vstv %s716_s30 }
  0x26   :  { %503 = vmatpush3.msra.mxu0 %v86_v11  ;;  %524 = vmatpush3.msra.mxu1 %v76_v12  ;;  %v253_v43 = vld [vmem:[#allocation5 + $0xf8] sm:$0xff]  ;;  %v252_v45 = vld [vmem:[#allocation5 + $0xf0] sm:$0xff]  ;;  %v242_v46 = vld [vmem:[#allocation5 + $0xa8] sm:$0xff] }
  0x27   :  { %504 = vmatprep.subr.mxu0 %v628_v2  ;;  %525 = vmatprep.subr.mxu1 %v628_v2  ;;  %v251_v47 = vld [vmem:[#allocation5 + $0xe8] sm:$0xff]  ;;  %v241_v48 = vld [vmem:[#allocation5 + $0xa0] sm:$0xff]  ;;  %v240_v50 = vld [vmem:[#allocation5 + $0x98] sm:$0xff] }
  0x28   :  { %505 = vmatpush3.msra.mxu0 %v85_v15  ;;  %526 = vmatpush3.msra.mxu1 %v75_v16  ;;  %v250_v49 = vld [vmem:[#allocation5 + $0xe0] sm:$0xff]  ;;  %v249_v51 = vld [vmem:[#allocation5 + $0xd8] sm:$0xff]  ;;  %v239_v52 = vld [vmem:[#allocation5 + $0x90] sm:$0xff] }
  0x29   :  { %506 = vmatprep.subr.mxu0 %v628_v2  ;;  %527 = vmatprep.subr.mxu1 %v628_v2  ;;  %v442_v53 = vld [vmem:[%s760_s1 + $0x8] sm:$0x3]  ;;  %v440_v63 = vld [vmem:[%s760_s1 + $0x4] sm:$0x3]  ;;  %v443_v8 = vld [vmem:[%s760_s1 + $0xa] sm:$0x3] }
  0x2a   :  { %507 = vmatpush3.msra.mxu0 %v84_v18  ;;  %528 = vmatpush3.msra.mxu1 %v74_v19  ;;  %v400_v59 = vmul.f32 %v442_v53, %v399_v54  ;;  %v404_v12 = vmul.f32 %v443_v8, %v399_v54  ;;  %v441_v16 = vld [vmem:[%s760_s1 + $0x6] sm:$0x3] }
  0x2b   :  { %508 = vmatprep.subr.mxu0 %v628_v2  ;;  %529 = vmatprep.subr.mxu1 %v628_v2 }
  0x2c   :  { %509 = vmatpush3.msra.mxu0 %v83_v20  ;;  %530 = vmatpush3.msra.mxu1 %v73_v21 }
  0x2d   :  { %510 = vmatprep.subr.mxu0 %v628_v2  ;;  %531 = vmatprep.subr.mxu1 %v628_v2 }
  0x2e   :  { %511 = vmatpush3.msra.mxu0 %v82_v22  ;;  %532 = vmatpush3.msra.mxu1 %v72_v23 }
  0x2f   :  { %512 = vmatprep.mubr.msk.f32.mxu0 %vm629_vm0, %v628_v2  ;;  %533 = vmatprep.mubr.msk.f32.mxu1 %vm629_vm0, %v628_v2 }
  0x30   :  { %536 = vmatprep.subr.mxu0 %v628_v2  ;;  %557 = vmatprep.subr.mxu1 %v628_v2 }
  0x31   :  { %v585_v24 = vpop.eup %584 }
  0x32   :  { %v61_v26 = vmul.f32 %v585_v24, %v59_v17 }
  0x34   :  { %v63_v27 = vsel %vm62_vm1, %v59_v17, %v61_v26 }
  0x35   :  { %v66_v28 = vsel %vm64_vm2, %v65_v25, %v63_v27 }
  0x36   :  { %v67_v29 = vadd.f32 1e-08, %v66_v28 }
  0x38   :  { %586 = vrcp.f32 %v67_v29 }
  0x45   :  { %v587_v31 = vpop.eup %586 }
  0x46   :  { %v69_v32 = vmul.f32 %v587_v31, %v444_v30 }
  0x48   :  { %v71_v33 = vmul.f32 %v439_v10, %v69_v32  ;;  %v70_v34 = vmul.f32 %v69_v32, %v44_v9 }
  0x4a   :  { %513 = vmatmul.mubr.msk.f32.vlgmr.msra.gmra.mxu0 %vm91_vm3, %v71_v33  ;;  %534 = vmatmul.mubr.msk.f32.vlgmr.msra.gmra.mxu1 %vm91_vm3, %v70_v34 }
  0x4b   :  { %537 = vmatpush3.msra.mxu0 %v257_v35  ;;  %558 = vmatpush3.msra.mxu1 %v247_v36 }
  0x4c   :  { %538 = vmatprep.subr.mxu0 %v628_v2  ;;  %559 = vmatprep.subr.mxu1 %v628_v2 }
  0x4d   :  { %539 = vmatpush3.msra.mxu0 %v256_v37  ;;  %560 = vmatpush3.msra.mxu1 %v246_v38 }
  0x4e   :  { %540 = vmatprep.subr.mxu0 %v628_v2  ;;  %561 = vmatprep.subr.mxu1 %v628_v2 }
  0x4f   :  { %541 = vmatpush3.msra.mxu0 %v255_v39  ;;  %562 = vmatpush3.msra.mxu1 %v245_v40 }
  0x50   :  { %542 = vmatprep.subr.mxu0 %v628_v2  ;;  %563 = vmatprep.subr.mxu1 %v628_v2 }
  0x51   :  { %543 = vmatpush3.msra.mxu0 %v254_v41  ;;  %564 = vmatpush3.msra.mxu1 %v244_v42 }
  0x52   :  { %544 = vmatprep.subr.mxu0 %v628_v2  ;;  %565 = vmatprep.subr.mxu1 %v628_v2 }
  0x53   :  { %545 = vmatpush3.msra.mxu0 %v253_v43  ;;  %566 = vmatpush3.msra.mxu1 %v243_v44 }
  0x54   :  { %546 = vmatprep.subr.mxu0 %v628_v2  ;;  %567 = vmatprep.subr.mxu1 %v628_v2 }
  0x55   :  { %547 = vmatpush3.msra.mxu0 %v252_v45  ;;  %568 = vmatpush3.msra.mxu1 %v242_v46 }
  0x56   :  { %548 = vmatprep.subr.mxu0 %v628_v2  ;;  %569 = vmatprep.subr.mxu1 %v628_v2 }
  0x57   :  { %549 = vmatpush3.msra.mxu0 %v251_v47  ;;  %570 = vmatpush3.msra.mxu1 %v241_v48 }
  0x58   :  { %550 = vmatprep.subr.mxu0 %v628_v2  ;;  %571 = vmatprep.subr.mxu1 %v628_v2 }
  0x59   :  { %551 = vmatpush3.msra.mxu0 %v250_v49  ;;  %572 = vmatpush3.msra.mxu1 %v240_v50 }
  0x5a   :  { %552 = vmatprep.subr.mxu0 %v628_v2  ;;  %573 = vmatprep.subr.mxu1 %v628_v2 }
  0x5b   :  { %553 = vmatpush3.msra.mxu0 %v249_v51  ;;  %554 = vmatprep.mubr.msk.f32.mxu0 %vm629_vm0, %v628_v2 }
  0x5c   :  { %574 = vmatpush3.msra.mxu1 %v239_v52  ;;  %575 = vmatprep.mubr.msk.f32.mxu1 %vm629_vm0, %v628_v2  ;;  %v422_v2 = vstv %s718_s4 }
  0x5d   :  { %555 = vmatmul.mubr.msk.f32.vlgmr.msra.gmra.mxu0 %vm91_vm3, %v71_v33  ;;  %576 = vmatmul.mubr.msk.f32.vlgmr.msra.gmra.mxu1 %vm91_vm3, %v70_v34 }
 0x10a   :  { %v161_v55 = vpop.f32.mrf.mxu0  ;;  %v234_v56 = vpop.f32.mrf.mxu1 }
 0x10b   :  { %v235_v58 = vadd.f32 %v234_v56, %v161_v55 }
 0x10c   :  { %v514_v60 = vpop.f32.mrf.mxu0  ;;  %v535_v61 = vpop.f32.mrf.mxu1 }
 0x10d   :  { %v402_v62 = vmul.f32 %v401_v57, %v235_v58 }
 0x10f   :  { %v403_v0 = vadd.f32 %v402_v62, %v400_v59 }
 0x111   :  { %v407_v3 = vsub.f32 %v403_v0, %v440_v63  ;;  %450 = vst.msk [vmem:[%s762_s3 + $0x4] sm:$0x3] %vm411_vm4, %v403_v0 }
 0x113   :  { %v409_v4 = vmul.f32 %v408_v1, %v407_v3  ;;  %v423_v5 = vmul.f32 %v422_v2, %v407_v3 }
 0x115   :  { %v410_v6 = vadd.f32 %v409_v4, %v403_v0  ;;  %v424_v7 = vadd.f32 %v423_v5, %v403_v0 }
 0x117   :  { %412 = vst.msk [vmem:[%s762_s3] sm:$0x3] %vm411_vm4, %v410_v6  ;;  %452 = vst.msk [vmem:[%s762_s3 + $0x8] sm:$0x3] %vm411_vm4, %v424_v7 }
 0x11d   :  { %v324_v9 = vpop.f32.mrf.mxu0  ;;  %v394_v10 = vpop.f32.mrf.mxu1 }
 0x11e   :  { %v395_v11 = vadd.f32 %v394_v10, %v324_v9 }
 0x11f   :  { %v556_v13 = vpop.f32.mrf.mxu0  ;;  %v577_v14 = vpop.f32.mrf.mxu1 }
 0x120   :  { %v405_v15 = vmul.f32 %v401_v57, %v395_v11 }
 0x122   :  { %v406_v17 = vadd.f32 %v405_v15, %v404_v12 }
 0x124   :  { %v413_v18 = vsub.f32 %v406_v17, %v441_v16  ;;  %451 = vst.msk [vmem:[%s762_s3 + $0x6] sm:$0x3] %vm411_vm4, %v406_v17 }
 0x126   :  { %v414_v19 = vmul.f32 %v413_v18, %v408_v1  ;;  %v427_v20 = vmul.f32 %v422_v2, %v413_v18 }
 0x128   :  { %v415_v21 = vadd.f32 %v414_v19, %v406_v17  ;;  %v428_v22 = vadd.f32 %v427_v20, %v406_v17 }
 0x12a   :  { %449 = vst.msk [vmem:[%s762_s3 + $0x2] sm:$0x3] %vm411_vm4, %v415_v21  ;;  %453 = vst.msk [vmem:[%s762_s3 + $0xa] sm:$0x3] %vm411_vm4, %v428_v22 }
 0x12b   :  { %435 = vsyncpa [#allocation3], 1 }
 0x12c   :  { %436 = vsyncpa [#allocation4], 1 }

</bundles_post_ra>
